<compile_context>
chip_gen: v7x
topology: tpu7x:2x2x1
jax: 0.10.0
libtpu: 0.0.40
codegen_flags: <defaults>
</compile_context>

<pallas_src>
import functools
import math

import jax
import jax.numpy as jnp
from jax import lax
from jax.experimental import pallas as pl
from jax.experimental.pallas import tpu as pltpu

LN_EPS = 1e-12                      # BERT layer_norm_eps


# --------------------------------------------------------------------------- #
# Per-generation tuning
# --------------------------------------------------------------------------- #
@functools.lru_cache(maxsize=None)
def _tpu_defaults():
    kind = ""
    try:
        kind = jax.devices()[0].device_kind.lower()
    except Exception:
        pass
    if "v7" in kind:     # 64 MiB VMEM per TC, 3.2 TB/s HBM -> tm=512 is compute-bound
        return {"tm": 512, "vmem": 48 * 1024 * 1024, "exp_bf16": True}
    if "v6" in kind:     # 128 MiB VMEM, high flop/byte ridge -> big row tiles
        return {"tm": 1024, "vmem": 100 * 1024 * 1024, "exp_bf16": True}
    if "v5" in kind:     # no bf16 EUP/VPU path
        return {"tm": 512, "vmem": 64 * 1024 * 1024, "exp_bf16": False}
    return {"tm": 512, "vmem": 48 * 1024 * 1024, "exp_bf16": False}


# --------------------------------------------------------------------------- #
# Tile-size helpers (small test shapes -> full-dim blocks; real shapes -> tiled)
# --------------------------------------------------------------------------- #
def _row_tile(dim, target):
    """Tile for a row (sublane) axis: full dim if small, else a multiple of 8."""
    if dim <= target:
        return dim
    for t in range(target, 7, -1):
        if t % 8 == 0 and dim % t == 0:
            return t
    return target - target % 8          # partial last block (rows are independent)


def _contract_tile(dim, target):
    """Tile for the contraction axis: must divide `dim` exactly, multiple of 128."""
    if dim <= target:
        return dim
    t = target - target % 128
    while t > 0:
        if dim % t == 0:
            return t
        t -= 128
    return dim


# --------------------------------------------------------------------------- #
# Dense: tiled matmul + bias (+gelu/tanh) (+residual + LayerNorm) epilogue
# --------------------------------------------------------------------------- #
def _dense_kernel(*refs, activation, fuse_ln, eps):
    if fuse_ln:
        x_ref, w_ref, b_ref, r_ref, g_ref, bt_ref, o_ref, acc_ref = refs
    else:
        x_ref, w_ref, b_ref, o_ref, acc_ref = refs

    k = pl.program_id(1)
    slot = pl.program_id(0) % 2          # ping-pong accumulator across row tiles

    @pl.when(k == 0)
    def _init():
        acc_ref[slot] = jnp.zeros(acc_ref.shape[1:], jnp.float32)

    acc_ref[slot] += jnp.dot(x_ref[...], w_ref[...],
                             preferred_element_type=jnp.float32)

    @pl.when(k == pl.num_programs(1) - 1)
    def _finalize():
        y = acc_ref[slot] + b_ref[...]
        if activation == "gelu":         # exact (erf) gelu, as in BERT
            y = 0.5 * y * (1.0 + lax.erf(y * (1.0 / math.sqrt(2.0))))
        elif activation == "tanh":       # pooler activation
            y = jnp.tanh(y)
        if fuse_ln:                      # residual add + LayerNorm (fp32 stats)
            y = y + r_ref[...].astype(jnp.float32)
            mu = jnp.mean(y, axis=-1, keepdims=True)
            var = jnp.mean((y - mu) * (y - mu), axis=-1, keepdims=True)
            y = (y - mu) * lax.rsqrt(var + eps) * g_ref[...] + bt_ref[...]
        o_ref[...] = y.astype(o_ref.dtype)


def dense(x, w, b, *, activation=None, residual=None, ln=None,
          out_dtype=jnp.bfloat16, tm_target=None, tk_target=512):
    """y = act(x @ w + b) [+ residual, LayerNorm].  N kept whole per tile so the
    LayerNorm epilogue sees the full hidden dimension."""
    cfg = _tpu_defaults()
    if tm_target is None:
        tm_target = cfg["tm"]
    M, K = x.shape
    N = w.shape[1]
    tm = _row_tile(M, tm_target)
    tk = _contract_tile(K, tk_target)
    grid = (pl.cdiv(M, tm), K // tk)

    in_specs = [
        pl.BlockSpec((tm, tk), lambda i, k: (i, k)),
        pl.BlockSpec((tk, N), lambda i, k: (k, 0)),
        pl.BlockSpec((1, N), lambda i, k: (0, 0)),
    ]
    args = [x, w, b.reshape(1, N).astype(jnp.float32)]

    fuse_ln = ln is not None
    if fuse_ln:
        gamma, beta = ln
        in_specs += [
            pl.BlockSpec((tm, N), lambda i, k: (i, 0)),
            pl.BlockSpec((1, N), lambda i, k: (0, 0)),
            pl.BlockSpec((1, N), lambda i, k: (0, 0)),
        ]
        args += [residual,
                 gamma.reshape(1, N).astype(jnp.float32),
                 beta.reshape(1, N).astype(jnp.float32)]

    flops = int(2 * M * K * N)
    trans = int(M * N) if activation in ("gelu", "tanh") else 0
    bytes_accessed = int(M * K * x.dtype.itemsize
                         + grid[0] * K * N * w.dtype.itemsize     # weight re-stream
                         + M * N * jnp.dtype(out_dtype).itemsize
                         + (M * N * residual.dtype.itemsize if fuse_ln else 0))

    return pl.pallas_call(
        functools.partial(_dense_kernel, activation=activation,
                          fuse_ln=fuse_ln, eps=LN_EPS),
        out_shape=jax.ShapeDtypeStruct((M, N), out_dtype),
        grid=grid,
        in_specs=in_specs,
        out_specs=pl.BlockSpec((tm, N), lambda i, k: (i, 0)),
        scratch_shapes=[pltpu.VMEM((2, tm, N), jnp.float32)],      # ping-pong acc
        compiler_params=pltpu.CompilerParams(
            dimension_semantics=("parallel", "arbitrary"),
            vmem_limit_bytes=cfg["vmem"]),
        cost_estimate=pl.CostEstimate(flops=flops, transcendentals=trans,
                                      bytes_accessed=bytes_accessed),
    )(*args)


# --------------------------------------------------------------------------- #
# LayerNorm (row-tiled, memory bound)
# --------------------------------------------------------------------------- #
def _ln_kernel(x_ref, g_ref, b_ref, o_ref, *, eps):
    x = x_ref[...].astype(jnp.float32)
    mu = jnp.mean(x, axis=-1, keepdims=True)
    var = jnp.mean((x - mu) * (x - mu), axis=-1, keepdims=True)
    o_ref[...] = ((x - mu) * lax.rsqrt(var + eps) * g_ref[...]
                  + b_ref[...]).astype(o_ref.dtype)


def layernorm(x, gamma, beta, out_dtype=jnp.bfloat16, tm_target=512):
    cfg = _tpu_defaults()
    M, H = x.shape
    tm = _row_tile(M, tm_target)
    return pl.pallas_call(
        functools.partial(_ln_kernel, eps=LN_EPS),
        out_shape=jax.ShapeDtypeStruct((M, H), out_dtype),
        grid=(pl.cdiv(M, tm),),
        in_specs=[pl.BlockSpec((tm, H), lambda i: (i, 0)),
                  pl.BlockSpec((1, H), lambda i: (0, 0)),
                  pl.BlockSpec((1, H), lambda i: (0, 0))],
        out_specs=pl.BlockSpec((tm, H), lambda i: (i, 0)),
        compiler_params=pltpu.CompilerParams(
            dimension_semantics=("parallel",),
            vmem_limit_bytes=cfg["vmem"]),
    )(x, gamma.reshape(1, H).astype(jnp.float32),
      beta.reshape(1, H).astype(jnp.float32))


# --------------------------------------------------------------------------- #
# Attention: grid=(B, head_pairs), head-pair-major packed QKV, lane-dense I/O
# --------------------------------------------------------------------------- #
def _heads_per_block(num_heads, head_dim, hidden):
    """Largest of {2,1} heads per grid step whose blocks satisfy the 128-lane rule."""
    for hpb in (2, 1):
        if num_heads % hpb:
            continue
        w = hpb * head_dim
        if (w % 128 == 0 or w == hidden) and ((3 * w) % 128 == 0 or 3 * w == 3 * hidden):
            return hpb
    return num_heads        # full block == full array dims, always legal


def _attn_kernel(qkv_ref, mb_ref, o_ref, *, heads_per_block, head_dim, exp_bf16):
    """One batch element x one head group.  qkv block layout: [Q_grp | K_grp | V_grp]."""
    W = heads_per_block * head_dim
    x = qkv_ref[0]                                   # (S, 3W) bf16
    mb = mb_ref[0]                                   # (1, S)  fp32 mask bias
    qg = x[:, 0:W]
    kg = x[:, W:2 * W]
    vg = x[:, 2 * W:3 * W]

    ctx = []
    for h in range(heads_per_block):
        lo, hi = h * head_dim, (h + 1) * head_dim
        q = qg[:, lo:hi]
        k = kg[:, lo:hi]
        v = vg[:, lo:hi]
        # scale already folded into the Q weight columns; contract on dim 1 so the
        # K transpose is handled inside the MXU operand feed (no XLU transpose).
        s = lax.dot_general(q, k, (((1,), (1,)), ((), ())),
                            preferred_element_type=jnp.float32) + mb
        s = s - jnp.max(s, axis=-1, keepdims=True)
        if exp_bf16:                                  # bf16 EUP exp (v6e/v7x)
            p = jnp.exp(s.astype(jnp.bfloat16))
            l = jnp.sum(p.astype(jnp.float32), axis=-1, keepdims=True)
        else:
            p = jnp.exp(s)
            l = jnp.sum(p, axis=-1, keepdims=True)
        p = p * pl.reciprocal(l, approx=True)
        ctx.append(jnp.dot(p.astype(v.dtype), v, preferred_element_type=jnp.float32))

    out = ctx[0] if len(ctx) == 1 else jnp.concatenate(ctx, axis=-1)
    o_ref[0] = out.astype(o_ref.dtype)               # single lane-dense store


def attention(qkv, mask_bias, num_heads, hidden_size):
    """qkv: (B, S, 3H) in head-group-major column order (see _qkv_permutation)."""
    cfg = _tpu_defaults()
    B, S, H3 = qkv.shape
    H = hidden_size
    dh = H // num_heads
    hpb = _heads_per_block(num_heads, dh, H)
    n_grp = num_heads // hpb
    W = hpb * dh

    flops = int(4 * B * num_heads * S * S * dh)
    trans = int(B * num_heads * S * S)
    bytes_accessed = int(qkv.size * qkv.dtype.itemsize + B * S * H * 2
                         + mask_bias.size * 4)

    return pl.pallas_call(
        functools.partial(_attn_kernel, heads_per_block=hpb, head_dim=dh,
                          exp_bf16=cfg["exp_bf16"]),
        out_shape=jax.ShapeDtypeStruct((B, S, H), jnp.bfloat16),
        grid=(B, n_grp),
        in_specs=[pl.BlockSpec((1, S, 3 * W), lambda b, p: (b, 0, p)),
                  pl.BlockSpec((1, 1, S), lambda b, p: (b, 0, 0))],
        out_specs=pl.BlockSpec((1, S, W), lambda b, p: (b, 0, p)),
        compiler_params=pltpu.CompilerParams(
            dimension_semantics=("parallel", "parallel"),
            vmem_limit_bytes=cfg["vmem"]),
        cost_estimate=pl.CostEstimate(flops=flops, transcendentals=trans,
                                      bytes_accessed=bytes_accessed),
    )(qkv, mask_bias)


def _qkv_permutation(H, num_heads, dh, hpb):
    """Column permutation: standard [Q|K|V] -> per-head-group [Qg | Kg | Vg]."""
    chunks = []
    for g0 in range(0, num_heads, hpb):
        base = g0 * dh
        idx = jnp.arange(base, base + hpb * dh)
        chunks += [idx, H + idx, 2 * H + idx]
    return jnp.concatenate(chunks)


def prepare_qkv(w_qkv, b_qkv, H, num_heads):
    """Fold the 1/sqrt(dh) softmax scale into the Q columns and permute to the
    head-group-major layout the attention kernel expects (one-time, offline)."""
    dh = H // num_heads
    hpb = _heads_per_block(num_heads, dh, H)
    scale = 1.0 / math.sqrt(dh)
    col_scale = jnp.concatenate([jnp.full((H,), scale, jnp.float32),
                                 jnp.ones((2 * H,), jnp.float32)])
    perm = _qkv_permutation(H, num_heads, dh, hpb)
    w = (w_qkv.astype(jnp.float32) * col_scale[None, :]).astype(w_qkv.dtype)[:, perm]
    b = (b_qkv.astype(jnp.float32) * col_scale)[perm]
    return w, b


# --------------------------------------------------------------------------- #
# all_score: sent_feat @ M @ sent_feat^T   (single small MXU kernel)
# --------------------------------------------------------------------------- #
def _all_score_kernel(e_ref, m_ref, o_ref):
    e = e_ref[...]
    em = jnp.dot(e, m_ref[...], preferred_element_type=jnp.float32)
    o_ref[...] = lax.dot_general(em, e, (((1,), (1,)), ((), ())),
                                 preferred_element_type=jnp.float32)


def all_score(feat, middle):
    cfg = _tpu_defaults()
    B, H = feat.shape
    return pl.pallas_call(
        _all_score_kernel,
        out_shape=jax.ShapeDtypeStruct((B, B), jnp.float32),
        grid=(1,),
        in_specs=[pl.BlockSpec((B, H), lambda i: (0, 0)),
                  pl.BlockSpec((H, H), lambda i: (0, 0))],
        out_specs=pl.BlockSpec((B, B), lambda i: (0, 0)),
        compiler_params=pltpu.CompilerParams(
            dimension_semantics=("arbitrary",),
            vmem_limit_bytes=cfg["vmem"]),
    )(feat, middle)


# --------------------------------------------------------------------------- #
# Model (wrapper around the kernels)
# --------------------------------------------------------------------------- #
def init_params(key, cfg):
    H = cfg["hidden_size"]
    I = cfg["intermediate_size"]
    keys = iter(jax.random.split(key, 128))

    def normal(shape, std=0.02, dtype=jnp.float32):
        return (std * jax.random.normal(next(keys), shape, jnp.float32)).astype(dtype)

    bf = jnp.bfloat16
    p = {
        "word_emb": normal((cfg["vocab_size"], H)).at[0].set(0.0),  # padding_idx=0
        "pos_emb": normal((cfg["max_position_embeddings"], H)),
        "x_emb": normal((cfg["max_2d_position_embeddings"], H)),
        "y_emb": normal((cfg["max_2d_position_embeddings"], H)),
        "h_emb": normal((cfg["max_2d_position_embeddings"], H)),
        "w_emb": normal((cfg["max_2d_position_embeddings"], H)),
        "tt_emb": normal((cfg["type_vocab_size"], H)),
        "emb_ln_g": jnp.ones((H,), jnp.float32),
        "emb_ln_b": jnp.zeros((H,), jnp.float32),
        "pooler_w": normal((H, H), dtype=bf),
        "pooler_b": jnp.zeros((H,), jnp.float32),
        # PyTorch hard-codes joint_matrix as 768x768 (== hidden_size of the real
        # checkpoint); here matrix_dim == hidden_size so the bilinear forms typecheck.
        "joint_matrix": jax.random.uniform(next(keys), (H, H), jnp.float32),
    }
    layers = []
    for _ in range(cfg["num_layers"]):
        layers.append(
            {
                # fused Q|K|V projection (standard [Q|K|V] column order; permuted +
                # scale-folded once by prepare_qkv before use)
                "w_qkv": normal((H, 3 * H), dtype=bf),
                "b_qkv": jnp.zeros((3 * H,), jnp.float32),
                "wo": normal((H, H), dtype=bf), "bo": jnp.zeros((H,), jnp.float32),
                "ln1_g": jnp.ones((H,), jnp.float32), "ln1_b": jnp.zeros((H,), jnp.float32),
                "wi": normal((H, I), dtype=bf), "bi": jnp.zeros((I,), jnp.float32),
                "wo2": normal((I, H), dtype=bf), "bo2": jnp.zeros((H,), jnp.float32),
                "ln2_g": jnp.ones((H,), jnp.float32), "ln2_b": jnp.zeros((H,), jnp.float32),
            }
        )
    p["layers"] = layers
    return p


def bert_layer(hidden, mask_bias, p, B, S, num_heads):
    M, H = hidden.shape

    # one-time layout prep (scale fold + head-group-major column permutation)
    w_qkv, b_qkv = prepare_qkv(p["w_qkv"], p["b_qkv"], H, num_heads)

    # fused QKV projection -> packed (B, S, 3H); no head transposes in JAX
    qkv = dense(hidden, w_qkv, b_qkv)                              # (M, 3H) bf16
    ctx = attention(qkv.reshape(B, S, 3 * H), mask_bias, num_heads, H)
    ctx = ctx.reshape(M, H)                                        # merged heads

    # attention output projection + residual + LayerNorm fused in the epilogue
    hidden = dense(ctx, p["wo"], p["bo"],
                   residual=hidden, ln=(p["ln1_g"], p["ln1_b"]))

    # FFN: gelu intermediate, then output projection + residual + LayerNorm
    inter = dense(hidden, p["wi"], p["bi"], activation="gelu")
    hidden = dense(inter, p["wo2"], p["bo2"],
                   residual=hidden, ln=(p["ln2_g"], p["ln2_b"]))
    return hidden


def layoutlm_forward(params, input_ids, bbox, attention_mask, edge, cfg):
    B, S = input_ids.shape
    H = cfg["hidden_size"]
    num_heads = cfg["num_heads"]

    # --- LayoutLM embeddings: gathers + sum in plain JAX, LayerNorm as a
    #     row-tiled Pallas kernel (bf16 input halves the HBM round trip) ---
    position_ids = jnp.broadcast_to(jnp.arange(S, dtype=jnp.int32), (B, S))
    token_type_ids = jnp.zeros_like(input_ids)
    emb_sum = (
        jnp.take(params["word_emb"], input_ids, axis=0)
        + jnp.take(params["pos_emb"], position_ids, axis=0)
        + jnp.take(params["x_emb"], bbox[:, :, 0], axis=0)
        + jnp.take(params["y_emb"], bbox[:, :, 1], axis=0)
        + jnp.take(params["x_emb"], bbox[:, :, 2], axis=0)
        + jnp.take(params["y_emb"], bbox[:, :, 3], axis=0)
        + jnp.take(params["h_emb"], bbox[:, :, 3] - bbox[:, :, 1], axis=0)
        + jnp.take(params["w_emb"], bbox[:, :, 2] - bbox[:, :, 0], axis=0)
        + jnp.take(params["tt_emb"], token_type_ids, axis=0)
    ).reshape(B * S, H).astype(jnp.bfloat16)
    hidden = layernorm(emb_sum, params["emb_ln_g"], params["emb_ln_b"])  # bf16
    # dropout(hidden_dropout_prob) -> identity in eval mode

    # --- extended attention mask: (1 - mask) * -10000, shape (B, 1, S) ---
    mask_bias = (1.0 - attention_mask.astype(jnp.float32))[:, None, :] * -10000.0

    # --- BERT encoder ---
    for layer_params in params["layers"]:
        hidden = bert_layer(hidden, mask_bias, layer_params, B, S, num_heads)
    sequence_output = hidden.reshape(B, S, H)

    # --- pooler: first token -> dense -> tanh (fp32 output for the score heads) ---
    pooled_output = dense(sequence_output[:, 0, :], params["pooler_w"],
                          params["pooler_b"], activation="tanh",
                          out_dtype=jnp.float32)
    sent_feat = pooled_output                      # dropout -> identity

    # --- link-prediction heads ---
    # all_score = sent_feat @ M @ sent_feat^T   (single small MXU kernel)
    asr = all_score(sent_feat, params["joint_matrix"])
    # pair_score[i, j] == center_i @ M @ neighbor_{i,j}^T
    #                  == all_score[edge[i,0], edge[i,1+j]]  -> pure gather
    ps = asr[edge[:, :1], edge[:, 1:]]
    return {"pair_score": ps, "all_score": asr, "sent_embedding": None}


# --------------------------------------------------------------------------- #
if __name__ == "__main__":
    cfg = dict(
        vocab_size=100,
        hidden_size=32,
        num_heads=2,
        num_layers=2,
        intermediate_size=64,
        max_position_embeddings=64,
        max_2d_position_embeddings=128,
        type_vocab_size=2,
    )
    B, S = 2, 8

    key = jax.random.PRNGKey(0)
    kp, k1, k2, k3, k4, k5 = jax.random.split(key, 6)
    params = init_params(kp, cfg)

    input_ids = jax.random.randint(k1, (B, S), 1, cfg["vocab_size"], dtype=jnp.int32)
    x0 = jax.random.randint(k2, (B, S), 0, 64, dtype=jnp.int32)
    y0 = jax.random.randint(k3, (B, S), 0, 64, dtype=jnp.int32)
    dw = jax.random.randint(k4, (B, S), 0, 64, dtype=jnp.int32)
    dh = jax.random.randint(k5, (B, S), 0, 64, dtype=jnp.int32)
    bbox = jnp.stack([x0, y0, x0 + dw, y0 + dh], axis=-1)  # (B, S, 4), x1>=x0, y1>=y0

    attention_mask = jnp.ones((B, S), jnp.int32).at[1, 6:].set(0)
    edge = jnp.array([[0, 1, 0, 1], [1, 0, 1, 0]], jnp.int32)  # (Be, 1 + K) indices

    outputs = layoutlm_forward(params, input_ids, bbox, attention_mask, edge, cfg)
    jax.block_until_ready(outputs)
    assert outputs["pair_score"].shape == (edge.shape[0], edge.shape[1] - 1)
    assert outputs["all_score"].shape == (B, B)
    print("KERNEL_OK")
</pallas_src>

<mosaic_0001>
module attributes {stable_mosaic.version = 11 : i64} {
  func.func @_ln_kernel(%arg0: i32, %arg1: memref<16x32xbf16, #tpu.memory_space<vmem>>, %arg2: memref<1x32xf32, #tpu.memory_space<vmem>>, %arg3: memref<1x32xf32, #tpu.memory_space<vmem>>, %arg4: memref<16x32xbf16, #tpu.memory_space<vmem>>) attributes {dimension_semantics = [#tpu.dimension_semantics<parallel>], iteration_bounds = array<i64: 1>, scalar_prefetch = 0 : i64, scratch_operands = 0 : i64, tpu.core_type = #tpu.core_type<tc>, window_params = [{transform_indices = @transform_0, window_bounds = array<i64: 16, 32>}, {pipeline_mode = #tpu.pipeline_mode<synchronous>, transform_indices = @transform_1, window_bounds = array<i64: 1, 32>}, {pipeline_mode = #tpu.pipeline_mode<synchronous>, transform_indices = @transform_2, window_bounds = array<i64: 1, 32>}, {transform_indices = @transform_3, window_bounds = array<i64: 16, 32>}]} {
    %c0 = arith.constant 0 : index
    %c0_0 = arith.constant 0 : index
    %0 = vector.load %arg1[%c0, %c0_0] : memref<16x32xbf16, #tpu.memory_space<vmem>>, vector<16x32xbf16>
    %1 = arith.extf %0 : vector<16x32xbf16> to vector<16x32xf32>
    %cst = arith.constant dense<0.000000e+00> : vector<16xf32>
    %2 = vector.multi_reduction <add>, %1, %cst [1] : vector<16x32xf32> to vector<16xf32>
    %3 = vector.shape_cast %2 : vector<16xf32> to vector<16x1xf32>
    %cst_1 = arith.constant 3.200000e+01 : f32
    %4 = vector.broadcast %cst_1 : f32 to vector<16x1xf32>
    %5 = arith.divf %3, %4 : vector<16x1xf32>
    %6 = vector.broadcast %5 : vector<16x1xf32> to vector<16x32xf32>
    %7 = arith.subf %1, %6 : vector<16x32xf32>
    %8 = vector.broadcast %5 : vector<16x1xf32> to vector<16x32xf32>
    %9 = arith.subf %1, %8 : vector<16x32xf32>
    %10 = arith.mulf %7, %9 : vector<16x32xf32>
    %cst_2 = arith.constant dense<0.000000e+00> : vector<16xf32>
    %11 = vector.multi_reduction <add>, %10, %cst_2 [1] : vector<16x32xf32> to vector<16xf32>
    %12 = vector.shape_cast %11 : vector<16xf32> to vector<16x1xf32>
    %cst_3 = arith.constant 3.200000e+01 : f32
    %13 = vector.broadcast %cst_3 : f32 to vector<16x1xf32>
    %14 = arith.divf %12, %13 : vector<16x1xf32>
    %15 = vector.broadcast %5 : vector<16x1xf32> to vector<16x32xf32>
    %16 = arith.subf %1, %15 : vector<16x32xf32>
    %cst_4 = arith.constant 9.99999996E-13 : f32
    %17 = vector.broadcast %cst_4 : f32 to vector<16x1xf32>
    %18 = arith.addf %14, %17 : vector<16x1xf32>
    %19 = math.rsqrt %18 : vector<16x1xf32>
    %20 = vector.broadcast %19 : vector<16x1xf32> to vector<16x32xf32>
    %21 = arith.mulf %16, %20 : vector<16x32xf32>
    %c0_5 = arith.constant 0 : index
    %c0_6 = arith.constant 0 : index
    %22 = vector.load %arg2[%c0_5, %c0_6] : memref<1x32xf32, #tpu.memory_space<vmem>>, vector<1x32xf32>
    %23 = vector.broadcast %22 : vector<1x32xf32> to vector<16x32xf32>
    %24 = arith.mulf %21, %23 : vector<16x32xf32>
    %c0_7 = arith.constant 0 : index
    %c0_8 = arith.constant 0 : index
    %25 = vector.load %arg3[%c0_7, %c0_8] : memref<1x32xf32, #tpu.memory_space<vmem>>, vector<1x32xf32>
    %26 = vector.broadcast %25 : vector<1x32xf32> to vector<16x32xf32>
    %27 = arith.addf %24, %26 : vector<16x32xf32>
    %28 = arith.truncf %27 : vector<16x32xf32> to vector<16x32xbf16>
    %c0_9 = arith.constant 0 : index
    %c0_10 = arith.constant 0 : index
    %29 = vector.load %arg4[%c0_9, %c0_10] : memref<16x32xbf16, #tpu.memory_space<vmem>>, vector<16x32xbf16>
    tpu.vector_store %arg4[%c0_9, %c0_10], %28 {strides = array<i32>} : memref<16x32xbf16, #tpu.memory_space<vmem>>, vector<16x32xbf16>,
    return
  }
  func.func @transform_0(%arg0: i32) -> (i32, i32) {
    %c0_i32 = arith.constant 0 : i32
    %c0_i32_0 = arith.constant 0 : i32
    return %arg0, %c0_i32 : i32, i32
  }
  func.func @transform_1(%arg0: i32) -> (i32, i32) {
    %c0_i32 = arith.constant 0 : i32
    %c0_i32_0 = arith.constant 0 : i32
    %c0_i32_1 = arith.constant 0 : i32
    return %c0_i32, %c0_i32_0 : i32, i32
  }
  func.func @transform_2(%arg0: i32) -> (i32, i32) {
    %c0_i32 = arith.constant 0 : i32
    %c0_i32_0 = arith.constant 0 : i32
    %c0_i32_1 = arith.constant 0 : i32
    return %c0_i32, %c0_i32_0 : i32, i32
  }
  func.func @transform_3(%arg0: i32) -> (i32, i32) {
    %c0_i32 = arith.constant 0 : i32
    %c0_i32_0 = arith.constant 0 : i32
    return %arg0, %c0_i32 : i32, i32
  }
}

</mosaic_0001>

<bundles_post_ra>
// kernel: tpu_custom_call.1
= control target key start
LH: loop header
LB: loop body
LE: loop exit
PB: predicated region body
PF: predicated region fallthrough
CT: control target
= control target key end

     0   :  { %8 = vsyncpa [#allocation3], 0  ;;  %s237_s0 = inlined_call_operand.hbm [shape: bf16[16,32], index: 0, kind: input, shape index: {}]   ;;  %s238_s1 = inlined_call_operand.vmem [shape: f32[1,32], index: 1, kind: input, shape index: {}]   ;;  %s239_s2 = inlined_call_operand.vmem [shape: f32[1,32], index: 2, kind: input, shape index: {}]   ;;  %s240_s3 = inlined_call_operand.hbm [shape: bf16[16,32], index: 3, kind: output, shape index: {}]  }
   0x1   :  { %9 = vsyncpa [#allocation4], 0  ;;  %s173_s12 = smov [#allocation2]   ;;  %s125_s16 = scalar_lea.hbm %s237_s0, 128 }
   0x2   :  { %s15_s13 = sshll.u32 %s173_s12, 4  ;;  %p126_p0 = scmp.ne.s32.totalorder %s237_s0, %s125_s16  ;;  %s16_s13 = int_to_ptr.vmem [resolvable:$true] %s15_s13 }
   0x3   :  { %p129_p1 = scmp.lt.u32.totalorder %s125_s16, %s237_s0 }
   0x5   :  { %p131_p2 = pnand %p129_p1, %p126_p0 }
   0x7   :  { %134 = shalt.err (!%p131_p2)
}
   0x8   :  { %s135_s21 = scalar_lea.vmem %s16_s13, 128  ;;  %p140_p4 = scmp.lt.s32.totalorder %s16_s13, %s16_s13 }
   0x9   :  { %p136_p3 = scmp.ne.s32.totalorder %s16_s13, %s135_s21  ;;  %p141_p5 = scmp.lt.s32.totalorder %s135_s21, %s135_s21 }
   0xb   :  { %p142_p6 = por %p141_p5, %p140_p4 }
   0xd   :  { %p143_p7 = pnand %p142_p6, %p136_p3 }
   0xf   :  { %146 = shalt.err (!%p143_p7)
}
  0x10   :  { %s174_s22 = smov 64   ;;  %s175_s23 = smov 4  }
  0x11   :  { %21 = dma.hbm_to_vmem [thread:$0]  %s237_s0, 128, %s16_s13, [#allocation3], %s174_s22, %s174_s22, %s175_s23  }
  0x12   :  { %169 = dma.done.wait [#allocation3], 128  }
  0x13   :  { %170 = vsyncadd [#allocation3], 4294967168  ;;  %v114_v0 = vld [vmem:[#allocation2] sm:$0xff]   ;;  %vm33_vm0 = vcmask 261120   ;;  %vm87_vm1 = vcmask 257024   ;;  %s176_s29 = smov [#allocation5]  }
  0x14   :  { %v115_v1 = vunpack.c.l.bf16 %v114_v0  ;;  %v116_v2 = vunpack.c.h.bf16 %v114_v0  ;;  %v107_v22 = vld [vmem:[%s238_s1] ss:$0 sm:$0xff]  ;;  %s95_s30 = sshll.u32 %s176_s29, 4  ;;  %s96_s30 = int_to_ptr.vmem [resolvable:$true] %s95_s30 }
  0x15   :  { %v108_v24 = vld [vmem:[%s239_s2] ss:$0 sm:$0xff]  ;;  %s147_s1 = scalar_lea.vmem %s96_s30, 128  ;;  %p152_p9 = scmp.lt.s32.totalorder %s96_s30, %s96_s30 }
  0x16   :  { %v34_v3 = vsel %vm33_vm0, %v115_v1, 0.0  ;;  %v37_v4 = vsel %vm33_vm0, %v116_v2, 0.0  ;;  %p148_p8 = scmp.ne.s32.totalorder %s96_s30, %s147_s1  ;;  %p153_p10 = scmp.lt.s32.totalorder %s147_s1, %s147_s1 }
  0x17   :  { %35 = vadd.xlane.f32.xlu0 %v34_v3 }
  0x18   :  { %p154_p11 = por %p153_p10, %p152_p9 }
  0x1a   :  { %p155_p12 = pnand %p154_p11, %p148_p8 }
  0x1b   :  { %38 = vadd.xlane.f32.xlu0 %v37_v4 }
  0xa4   :  { %v36_v5 = vpop.xlane.xlu0 %35 }
  0xa5   :  { %v41_v6 = vmul.f32 0.03125, %v36_v5 }
  0xa7   :  { %v43_v7 = vsub.f32 %v115_v1, %v41_v6 }
  0xa8   :  { %v39_v8 = vpop.xlane.xlu0 %38 }
  0xa9   :  { %v42_v9 = vmul.f32 0.03125, %v39_v8  ;;  %v45_v10 = vmul.f32 %v43_v7, %v43_v7 }
  0xab   :  { %v44_v11 = vsub.f32 %v116_v2, %v42_v9  ;;  %v47_v12 = vsel %vm33_vm0, %v45_v10, 0.0 }
  0xac   :  { %48 = vadd.xlane.f32.xlu1 %v47_v12 }
  0xad   :  { %v46_v13 = vmul.f32 %v44_v11, %v44_v11 }
  0xaf   :  { %v50_v14 = vsel %vm33_vm0, %v46_v13, 0.0 }
  0xb0   :  { %51 = vadd.xlane.f32.xlu1 %v50_v14 }
 0x139   :  { %v49_v15 = vpop.xlane.xlu1 %48 }
 0x13a   :  { %v53_v16 = vmul.f32 0.03125, %v49_v15 }
 0x13c   :  { %v55_v17 = vadd.f32 1e-12, %v53_v16 }
 0x13d   :  { %v52_v18 = vpop.xlane.xlu1 %51 }
 0x13e   :  { %121 = vrsqrt.f32 %v55_v17  ;;  %v54_v19 = vmul.f32 0.03125, %v52_v18 }
 0x140   :  { %v56_v20 = vadd.f32 1e-12, %v54_v19 }
 0x142   :  { %123 = vrsqrt.f32 %v56_v20 }
 0x148   :  { %v122_v21 = vpop.eup %121 }
 0x149   :  { %v59_v23 = vmul.f32 %v122_v21, %v43_v7 }
 0x14b   :  { %v68_v25 = vmul.f32 %v107_v22, %v59_v23 }
 0x14c   :  { %v124_v26 = vpop.eup %123 }
 0x14d   :  { %v60_v27 = vmul.f32 %v124_v26, %v44_v11  ;;  %v77_v28 = vadd.f32 %v108_v24, %v68_v25 }
 0x14f   :  { %v69_v29 = vmul.f32 %v107_v22, %v60_v27  ;;  %v111_v30 = vpack.c.bf16 %v77_v28, %v77_v28 }
 0x151   :  { %v78_v31 = vadd.f32 %v108_v24, %v69_v29  ;;  %88 = vst.msk [vmem:[#allocation5] sm:$0xf] %vm87_vm1, %v111_v30 }
 0x153   :  { %v112_v32 = vpack.c.bf16 %v78_v31, %v78_v31 }
 0x155   :  { %89 = vst.msk [vmem:[#allocation5 + $0x4] sm:$0xf] %vm87_vm1, %v112_v32 }
 0x156   :  { %158 = shalt.err (!%p155_p12)
}
 0x157   :  { %s159_s5 = scalar_lea.hbm %s240_s3, 128 }
 0x158   :  { %p160_p13 = scmp.ne.s32.totalorder %s240_s3, %s159_s5  ;;  %p163_p0 = scmp.lt.u32.totalorder %s159_s5, %s240_s3 }
 0x15a   :  { %p165_p1 = pnand %p163_p0, %p160_p13 }
 0x15c   :  { %168 = shalt.err (!%p165_p1)
}
 0x15d   :  { %101 = dma.vmem_to_hbm [thread:$0]  %s96_s30, 128, %s240_s3, [#allocation4], %s174_s22, %s174_s22, %s175_s23  }
 0x15e   :  { %171 = dma.done.wait [#allocation4], 128  }
 0x15f   :  { %172 = vsyncadd [#allocation4], 4294967168 }
 0x160   :  { %105 = vsyncpa [#allocation3], 1 }
 0x161   :  { %106 = vsyncpa [#allocation4], 1 }

</bundles_post_ra>
